<compile_context>
chip_gen: v5e
topology: v5e:2x2
jax: 0.10.0
libtpu: 0.0.40
codegen_flags: <defaults>
</compile_context>

<pallas_src>
import functools

import jax
import jax.numpy as jnp
from jax import lax
from jax.experimental import pallas as pl
from jax.experimental.pallas import tpu as pltpu


def _pick_tile(total, candidates):
    for c in candidates:
        if total % c == 0:
            return c
    return total


def _pick_cout_tile(cout):
    if cout % 256 == 0:
        return 256
    if cout % 128 == 0:
        return 128
    return cout


# ----------------------- fused L2Norm + correlation -----------------------

def _corr_l2norm_kernel(fa_ref, fb_ref, o_ref):
    # FeatureL2Norm (over channels) fused with FeatureCorrelation.
    # fa_ref: (lt, C) rows = feature_A positions; fb_ref: (C, L_B).
    fa = fa_ref[...]
    fb = fb_ref[...]
    fa = fa * lax.rsqrt(jnp.sum(fa * fa, axis=1, keepdims=True) + 1e-6)
    fb = fb * lax.rsqrt(jnp.sum(fb * fb, axis=0, keepdims=True) + 1e-6)
    o_ref[...] = jnp.dot(fa.astype(jnp.bfloat16), fb.astype(jnp.bfloat16),
                         preferred_element_type=jnp.float32).astype(o_ref.dtype)


def correlation(feature_a, feature_b):
    # TODO(synk): the channel ordering of the correlation volume fed to the
    # regression convs is ambiguous in the provided (truncated) torch source;
    # we keep corr[la, lb] = <featA[:, la], featB[:, lb]> with feature_B
    # positions on the channel axis (same tensor as before, now channels-last).
    b, c, h, w = feature_a.shape
    l = h * w
    # feature_A positions go on the row (sublane) axis so the kernel does a
    # natural (M, K) x (K, N) matmul with no in-kernel transpose.
    fa_t = feature_a.reshape(b, c, l).transpose(0, 2, 1)      # (B, L_A, C)
    fb = feature_b.reshape(b, c, l)                           # (B, C, L_B)
    lt = _pick_tile(l, (512, 256, 128, 64, 32, 16, 8))
    return pl.pallas_call(
        _corr_l2norm_kernel,
        out_shape=jax.ShapeDtypeStruct((b, l, l), jnp.bfloat16),
        grid=(b, l // lt),
        in_specs=[pl.BlockSpec((None, lt, c), lambda bi, ri: (bi, ri, 0)),
                  pl.BlockSpec((None, c, l), lambda bi, ri: (bi, 0, 0))],
        out_specs=pl.BlockSpec((None, lt, l), lambda bi, ri: (bi, ri, 0)),
        compiler_params=pltpu.CompilerParams(
            dimension_semantics=("parallel", "parallel")),
    )(fa_t, fb)


# ---------------- fused conv + bias + InstanceNorm + ReLU ----------------
# Grid: (batch, cout_tiles, taps).  Taps ('arbitrary', innermost) stream one
# (Cin, Cout_tile) weight slab per step into VMEM; accumulation lives in a
# f32 VMEM scratch; bias + InstanceNorm2d + ReLU run at the last tap.

def _conv_in_relu_kernel(x_ref, w_ref, b_ref, o_ref, acc_ref, *,
                         kw, win, wo, inv_count):
    t = pl.program_id(2)

    @pl.when(t == 0)
    def _():
        acc_ref[...] = jnp.zeros_like(acc_ref)

    ki = t // kw
    kj = t - ki * kw
    off = ki * win + kj
    lout = acc_ref.shape[0]
    xs = x_ref[pl.ds(off, lout), :]                           # (lout, Cin) bf16
    acc_ref[...] += jnp.dot(xs, w_ref[...],
                            preferred_element_type=jnp.float32)

    @pl.when(t == pl.num_programs(2) - 1)
    def _():
        y = acc_ref[...] + b_ref[...]                         # (lout, Cout_t)
        # Column-validity mask (full-width rows; right edge is garbage,
        # excluded from the IN statistics and cropped in the wrapper).
        col = lax.broadcasted_iota(jnp.int32, (y.shape[0], 1), 0)
        mask = (col % win < wo).astype(jnp.float32)
        mean = jnp.sum(y * mask, axis=0, keepdims=True) * inv_count
        diff = (y - mean) * mask
        var = jnp.sum(diff * diff, axis=0, keepdims=True) * inv_count
        yn = (y - mean) * lax.rsqrt(var + 1e-5)
        o_ref[...] = jnp.maximum(yn, 0.0).astype(o_ref.dtype)


def conv_in_relu(x, layer):
    """Conv2d + bias + InstanceNorm2d + ReLU, channels-last bf16 in/out."""
    b, h, w, cin = x.shape
    wt, bias = layer["wt"], layer["bias"]          # (T, Cin_eff, Cout) bf16, (1, Cout) f32
    kh, kw = layer["kh"], layer["kw"]              # effective kernel (2x2 for the s2 4x4s)
    pad = layer["padding"]
    xp = jnp.pad(x, ((0, 0), (pad, pad), (pad, pad), (0, 0)))
    if layer["stride"] == 2:
        hp, wp = h + 2 * pad, w + 2 * pad
        assert hp % 2 == 0 and wp % 2 == 0
        hq, wq = hp // 2, wp // 2
        # NHWC space-to-depth: a 4x4/s2 conv == 2x2/s1 conv over (du, dv, Cin).
        xp = (xp.reshape(b, hq, 2, wq, 2, cin)
                .transpose(0, 1, 3, 2, 4, 5)
                .reshape(b, hq, wq, 4 * cin))
        hin, win, cin_eff = hq, wq, 4 * cin
    else:
        hin, win, cin_eff = h + 2 * pad, w + 2 * pad, cin
    cout = wt.shape[2]
    ho, wo = hin - kh + 1, win - kw + 1
    lout = ho * win                                 # full-width output rows
    li = hin * win + (kw - 1)

    x_flat = xp.reshape(b, hin * win, cin_eff)
    if kw > 1:
        x_flat = jnp.pad(x_flat, ((0, 0), (0, kw - 1), (0, 0)))

    taps = kh * kw
    cout_t = _pick_cout_tile(cout)
    n_ct = cout // cout_t

    # Explicit scoped-VMEM budget sized from the actual blocks (+ headroom).
    vmem_est = (2 * li * cin_eff * 2 + 2 * cin_eff * cout_t * 2 +
                2 * lout * cout_t * 2 + lout * cout_t * 4)
    vmem_limit = int(min(max(2 * vmem_est + (2 << 20), 32 * 1024 * 1024),
                         100 * 1024 * 1024))

    kernel = functools.partial(_conv_in_relu_kernel, kw=kw, win=win, wo=wo,
                               inv_count=1.0 / float(ho * wo))
    y = pl.pallas_call(
        kernel,
        out_shape=jax.ShapeDtypeStruct((b, lout, cout), jnp.bfloat16),
        grid=(b, n_ct, taps),
        in_specs=[
            pl.BlockSpec((None, li, cin_eff), lambda bi, ct, t: (bi, 0, 0)),
            pl.BlockSpec((None, cin_eff, cout_t), lambda bi, ct, t: (t, 0, ct)),
            pl.BlockSpec((1, cout_t), lambda bi, ct, t: (0, ct)),
        ],
        out_specs=pl.BlockSpec((None, lout, cout_t), lambda bi, ct, t: (bi, 0, ct)),
        scratch_shapes=[pltpu.VMEM((lout, cout_t), jnp.float32)],
        compiler_params=pltpu.CompilerParams(
            dimension_semantics=("parallel", "parallel", "arbitrary"),
            vmem_limit_bytes=vmem_limit),
    )(x_flat, wt, bias)
    return y.reshape(b, ho, win, cout)[:, :, :wo, :]


# --------------------------- linear + tanh (single step) ---------------------------

def _linear_tanh_kernel(x_ref, w_ref, b_ref, o_ref):
    o_ref[...] = jnp.tanh(
        jnp.dot(x_ref[...], w_ref[...], preferred_element_type=jnp.float32)
        + b_ref[...])


def linear_tanh(x, w_t, bias):
    # x: (M, K) bf16, w_t: (K, N) bf16 (pre-transposed / pre-permuted), bias: (1, N) f32
    m = x.shape[0]
    n = w_t.shape[1]
    return pl.pallas_call(
        _linear_tanh_kernel,
        out_shape=jax.ShapeDtypeStruct((m, n), jnp.float32),
    )(x.astype(jnp.bfloat16), w_t, bias)


# ----------------------- parameter preparation (one-time) -----------------------

def prepare_params(params, feat_h, feat_w):
    """Relayout PyTorch-format weights into kernel layouts (done once)."""
    configs = [("w1", "b1", 2, 1), ("w2", "b2", 2, 1),
               ("w3", "b3", 1, 1), ("w4", "b4", 1, 1)]
    layers = []
    h, w = feat_h, feat_w
    for wname, bname, stride, pad in configs:
        wgt = params[wname]
        bias = params[bname]
        cout, cin, kh, kw = wgt.shape
        if stride == 2:
            assert kh % 2 == 0 and kw % 2 == 0
            # w[co, ci, 2p+du, 2q+dv] -> wt[(p,q), (du,dv,ci), co]
            w6 = wgt.reshape(cout, cin, kh // 2, 2, kw // 2, 2)   # (co,ci,p,du,q,dv)
            wt = (w6.transpose(2, 4, 3, 5, 1, 0)                  # (p,q,du,dv,ci,co)
                    .reshape((kh // 2) * (kw // 2), 4 * cin, cout))
            kh_e, kw_e = kh // 2, kw // 2
            hin, win = (h + 2 * pad) // 2, (w + 2 * pad) // 2
        else:
            wt = wgt.transpose(2, 3, 1, 0).reshape(kh * kw, cin, cout)
            kh_e, kw_e = kh, kw
            hin, win = h + 2 * pad, w + 2 * pad
        ho, wo = hin - kh_e + 1, win - kw_e + 1
        layers.append(dict(wt=wt.astype(jnp.bfloat16),
                           bias=bias.reshape(1, cout).astype(jnp.float32),
                           kh=kh_e, kw=kw_e, stride=stride, padding=pad))
        h, w = ho, wo
    # Linear: permute PyTorch (N, C*H*W) columns to the kernel's (H*W*C)
    # channels-last flatten order and pre-transpose to (K, N), bf16.
    wl = params["wl"]
    n_out = wl.shape[0]
    c4 = params["w4"].shape[0]
    wl_t = (wl.reshape(n_out, c4, h, w).transpose(0, 2, 3, 1)
              .reshape(n_out, h * w * c4).T.astype(jnp.bfloat16))
    bl = params["bl"].reshape(1, n_out).astype(jnp.float32)
    return dict(layers=layers, wl_t=wl_t, bl=bl)


def feature_regression(prep, x):
    # FeatureRegression: 4x (conv + IN + ReLU) -> flatten -> linear -> tanh.
    for layer in prep["layers"]:
        x = conv_in_relu(x, layer)
    b = x.shape[0]
    x = x.reshape(b, -1)
    return linear_tanh(x, prep["wl_t"], prep["bl"])


# --------------------------------- TPS ---------------------------------

def make_tps_constants(out_h, out_w, grid_size):
    xs = jnp.linspace(-1.0, 1.0, out_w, dtype=jnp.float32)
    ys = jnp.linspace(-1.0, 1.0, out_h, dtype=jnp.float32)
    # torch.meshgrid(xs, ys) ('ij'): grid_X[i,j]=xs[i], grid_Y[i,j]=ys[j] -> (out_w, out_h)
    gx = jnp.broadcast_to(xs[:, None], (out_w, out_h)).reshape(-1)        # (L,)
    gy = jnp.broadcast_to(ys[None, :], (out_w, out_h)).reshape(-1)
    axis = jnp.linspace(-1.0, 1.0, grid_size, dtype=jnp.float32)
    p_y = jnp.repeat(axis, grid_size)
    p_x = jnp.tile(axis, grid_size)
    n = grid_size * grid_size
    dxm = p_x[:, None] - p_x[None, :]
    dym = p_y[:, None] - p_y[None, :]
    d2 = dxm ** 2 + dym ** 2
    d2 = jnp.where(d2 == 0.0, 1.0, d2)
    kmat = d2 * jnp.log(d2)
    p = jnp.concatenate([jnp.ones((n, 1), jnp.float32), p_x[:, None], p_y[:, None]], 1)
    L = jnp.concatenate([jnp.concatenate([kmat, p], 1),
                         jnp.concatenate([p.T, jnp.zeros((3, 3), jnp.float32)], 1)], 0)
    li = jnp.linalg.inv(L)
    # combined coefficient matrix: (Q @ m_mat) = [W | A]; m_mat[j, i] = Li[i, j]
    m_mat = li[:, :n].T                                                   # (N, N+3)
    # TPS radial basis + affine basis: constant w.r.t. theta -> (N+3, L)
    dx = p_x[:, None] - gx[None, :]
    dy = p_y[:, None] - gy[None, :]
    dist2 = dx * dx + dy * dy
    dist2 = jnp.where(dist2 == 0.0, 1.0, dist2)
    u = dist2 * jnp.log(dist2)
    basis = jnp.concatenate(
        [u, jnp.ones((1, gx.shape[0]), jnp.float32), gx[None, :], gy[None, :]], axis=0)
    return dict(m=m_mat, basis=basis, px=p_x.reshape(1, n), py=p_y.reshape(1, n),
                n=n, out_h=out_h, out_w=out_w)


def _tps_kernel(coeffs_ref, basis_ref, o_ref):
    o_ref[...] = jnp.dot(coeffs_ref[...], basis_ref[...],
                         preferred_element_type=jnp.float32)


def tps_grid_gen(tps, theta):
    b = theta.shape[0]
    n = tps["n"]
    out_h, out_w = tps["out_h"], tps["out_w"]
    L = out_h * out_w
    # Grid-invariant (tiny) work hoisted out of the kernel: control-point coeffs.
    qx = theta[:, :n] + tps["px"]
    qy = theta[:, n:] + tps["py"]
    coeffs = jnp.dot(jnp.concatenate([qx, qy], axis=0), tps["m"])         # (2B, N+3)
    # Large lane tiles so the mem-bound basis stream is not per-step-overhead bound.
    lt = L if L <= 32768 else _pick_tile(
        L, (32768, 16384, 8192, 4096, 2048, 1024, 512, 256, 128))
    out = pl.pallas_call(
        _tps_kernel,
        out_shape=jax.ShapeDtypeStruct((2 * b, L), jnp.float32),
        grid=(L // lt,),
        in_specs=[pl.BlockSpec((2 * b, n + 3), lambda i: (0, 0)),
                  pl.BlockSpec((n + 3, lt), lambda i: (0, i))],
        out_specs=pl.BlockSpec((2 * b, lt), lambda i: (0, i)),
        compiler_params=pltpu.CompilerParams(dimension_semantics=("parallel",)),
    )(coeffs, tps["basis"])
    # Faithful to the torch source: grid is (B, out_w, out_h, 2) ('ij' meshgrid).
    xp = out[:b].reshape(b, out_w, out_h)
    yp = out[b:].reshape(b, out_w, out_h)
    return jnp.stack([xp, yp], axis=3)


# --------------------------------- GDM ---------------------------------

def gdm_forward(prep, tps, feature_a, feature_b):
    output = {"theta_tps": None, "grid_tps": None, "depth": None, "segmt": None}
    corr = correlation(feature_a, feature_b)            # (B, L_A, L_B) bf16
    b = corr.shape[0]
    hf, wf = feature_a.shape[2], feature_a.shape[3]
    lb = corr.shape[2]
    corr_nhwc = corr.reshape(b, hf, wf, lb)             # channels-last conv input
    theta = feature_regression(prep, corr_nhwc)         # (B, 2*grid_size**2) f32
    output["theta_tps"] = theta
    output["grid_tps"] = tps_grid_gen(tps, theta)
    return output


# --------------------------------- main ---------------------------------

if __name__ == "__main__":
    key = jax.random.PRNGKey(0)
    B, C, HF, WF = 2, 32, 8, 8            # small stand-ins for the 512-ch / 32x20 features
    L = HF * WF                            # correlation "channels" (analogue of 640)
    grid_size = 5
    img_height, img_width = 32, 20         # small stand-ins for 512 x 320

    keys = jax.random.split(key, 8)
    feature_a = jax.random.normal(keys[0], (B, C, HF, WF), jnp.float32)
    feature_b = jax.random.normal(keys[1], (B, C, HF, WF), jnp.float32)

    def winit(k, shape, scale=0.05):
        return scale * jax.random.normal(k, shape, jnp.float32)

    # FeatureRegression with channel counts scaled to the small test shapes
    # (structure preserved: 4x4/s2, 4x4/s2, 3x3, 3x3 convs + IN + ReLU, linear, tanh).
    c1, c2, c3, c4 = 64, 32, 32, 16
    flat_feat = c4 * (HF // 4) * (WF // 4)
    params = {
        "w1": winit(keys[2], (c1, L, 4, 4)),  "b1": jnp.zeros((c1,), jnp.float32),
        "w2": winit(keys[3], (c2, c1, 4, 4)), "b2": jnp.zeros((c2,), jnp.float32),
        "w3": winit(keys[4], (c3, c2, 3, 3)), "b3": jnp.zeros((c3,), jnp.float32),
        "w4": winit(keys[5], (c4, c3, 3, 3)), "b4": jnp.zeros((c4,), jnp.float32),
        "wl": winit(keys[6], (2 * grid_size ** 2, flat_feat)),
        "bl": winit(keys[7], (2 * grid_size ** 2,)),
    }
    prep = prepare_params(params, HF, WF)
    tps = make_tps_constants(img_height, img_width, grid_size)

    out = gdm_forward(prep, tps, feature_a, feature_b)
    jax.block_until_ready(out)

    assert out["theta_tps"].shape == (B, 2 * grid_size ** 2)
    assert out["grid_tps"].shape == (B, img_width, img_height, 2)
    assert bool(jnp.all(jnp.isfinite(out["theta_tps"])))
    assert bool(jnp.all(jnp.isfinite(out["grid_tps"])))
    print("KERNEL_OK")
</pallas_src>

<mosaic_0001>
module attributes {stable_mosaic.version = 11 : i64} {
  func.func @_corr_l2norm_kernel(%arg0: i32, %arg1: i32, %arg2: memref<1x64x32xf32, #tpu.memory_space<vmem>>, %arg3: memref<1x32x64xf32, #tpu.memory_space<vmem>>, %arg4: memref<1x64x64xbf16, #tpu.memory_space<vmem>>) attributes {dimension_semantics = [#tpu.dimension_semantics<parallel>, #tpu.dimension_semantics<parallel>], iteration_bounds = array<i64: 2, 1>, scalar_prefetch = 0 : i64, scratch_operands = 0 : i64, tpu.core_type = #tpu.core_type<tc>, window_params = [{transform_indices = @transform_0, window_bounds = array<i64: 1, 64, 32>}, {transform_indices = @transform_1, window_bounds = array<i64: 1, 32, 64>}, {transform_indices = @transform_2, window_bounds = array<i64: 1, 64, 64>}]} {
    %c0 = arith.constant 0 : index
    %c0_0 = arith.constant 0 : index
    %c0_1 = arith.constant 0 : index
    %0 = vector.load %arg2[%c0, %c0_0, %c0_1] : memref<1x64x32xf32, #tpu.memory_space<vmem>>, vector<1x64x32xf32>
    %1 = vector.shape_cast %0 : vector<1x64x32xf32> to vector<64x32xf32>
    %c0_2 = arith.constant 0 : index
    %c0_3 = arith.constant 0 : index
    %c0_4 = arith.constant 0 : index
    %2 = vector.load %arg3[%c0_2, %c0_3, %c0_4] : memref<1x32x64xf32, #tpu.memory_space<vmem>>, vector<1x32x64xf32>
    %3 = vector.shape_cast %2 : vector<1x32x64xf32> to vector<32x64xf32>
    %4 = arith.mulf %1, %1 : vector<64x32xf32>
    %cst = arith.constant dense<0.000000e+00> : vector<64xf32>
    %5 = vector.multi_reduction <add>, %4, %cst [1] : vector<64x32xf32> to vector<64xf32>
    %6 = vector.shape_cast %5 : vector<64xf32> to vector<64x1xf32>
    %cst_5 = arith.constant 9.99999997E-7 : f32
    %7 = vector.broadcast %cst_5 : f32 to vector<64x1xf32>
    %8 = arith.addf %6, %7 : vector<64x1xf32>
    %9 = math.rsqrt %8 : vector<64x1xf32>
    %10 = vector.broadcast %9 : vector<64x1xf32> to vector<64x32xf32>
    %11 = arith.mulf %1, %10 : vector<64x32xf32>
    %12 = arith.mulf %3, %3 : vector<32x64xf32>
    %cst_6 = arith.constant dense<0.000000e+00> : vector<64xf32>
    %13 = vector.multi_reduction <add>, %12, %cst_6 [0] : vector<32x64xf32> to vector<64xf32>
    %14 = vector.shape_cast %13 : vector<64xf32> to vector<1x64xf32>
    %cst_7 = arith.constant 9.99999997E-7 : f32
    %15 = vector.broadcast %cst_7 : f32 to vector<1x64xf32>
    %16 = arith.addf %14, %15 : vector<1x64xf32>
    %17 = math.rsqrt %16 : vector<1x64xf32>
    %18 = vector.broadcast %17 : vector<1x64xf32> to vector<32x64xf32>
    %19 = arith.mulf %3, %18 : vector<32x64xf32>
    %20 = arith.truncf %11 : vector<64x32xf32> to vector<64x32xbf16>
    %21 = arith.truncf %19 : vector<32x64xf32> to vector<32x64xbf16>
    %cst_8 = arith.constant dense<0.000000e+00> : vector<64x64xf32>
    %22 = tpu.matmul %20, %21, %cst_8 {dimension_numbers = #tpu.dot_dimension_numbers<[1], [0], [0], [1], [0, 0, 1, 1], [], []>} : vector<64x32xbf16>, vector<32x64xbf16>, vector<64x64xf32> -> vector<64x64xf32>
    %23 = arith.truncf %22 : vector<64x64xf32> to vector<64x64xbf16>
    %c0_9 = arith.constant 0 : index
    %c0_10 = arith.constant 0 : index
    %c0_11 = arith.constant 0 : index
    %24 = vector.load %arg4[%c0_9, %c0_10, %c0_11] : memref<1x64x64xbf16, #tpu.memory_space<vmem>>, vector<1x64x64xbf16>
    %25 = vector.shape_cast %24 : vector<1x64x64xbf16> to vector<64x64xbf16>
    %26 = vector.shape_cast %23 : vector<64x64xbf16> to vector<1x64x64xbf16>
    tpu.vector_store %arg4[%c0_9, %c0_10, %c0_11], %26 {strides = array<i32>} : memref<1x64x64xbf16, #tpu.memory_space<vmem>>, vector<1x64x64xbf16>,
    return
  }
  func.func @transform_0(%arg0: i32, %arg1: i32) -> (i32, i32, i32) {
    %c0_i32 = arith.constant 0 : i32
    %c0_i32_0 = arith.constant 0 : i32
    return %arg0, %arg1, %c0_i32 : i32, i32, i32
  }
  func.func @transform_1(%arg0: i32, %arg1: i32) -> (i32, i32, i32) {
    %c0_i32 = arith.constant 0 : i32
    %c0_i32_0 = arith.constant 0 : i32
    %c0_i32_1 = arith.constant 0 : i32
    return %arg0, %c0_i32, %c0_i32_0 : i32, i32, i32
  }
  func.func @transform_2(%arg0: i32, %arg1: i32) -> (i32, i32, i32) {
    %c0_i32 = arith.constant 0 : i32
    %c0_i32_0 = arith.constant 0 : i32
    return %arg0, %arg1, %c0_i32 : i32, i32, i32
  }
}

</mosaic_0001>

<bundles_post_ra>
// kernel: tpu_custom_call.1
= control target key start
LH: loop header
LB: loop body
LE: loop exit
PB: predicated region body
PF: predicated region fallthrough
CT: control target
= control target key end

     0   :  { %7 = vsyncpa [#allocation3], 0  ;;  %s1006_s0 = inlined_call_operand.vmem [shape: f32[2,64,32], index: 0, kind: input, shape index: {}]   ;;  %s1007_s1 = inlined_call_operand.vmem [shape: f32[2,32,64], index: 1, kind: input, shape index: {}]   ;;  %s1008_s2 = inlined_call_operand.hbm [shape: bf16[2,64,64], index: 2, kind: output, shape index: {}]  }
   0x1   :  { %9 = vsyncpa [#allocation3 + $0x1], 0  ;;  %s741_s9 = smov 0   ;;  %s743_s10 = smov 0  }
   0x2   :  { %s745_s11 = smov 0   ;;  %s747_s12 = smov 0  }
   0x3   :  { %s749_s13 = smov 0   ;;  %s751_s14 = smov 0  }
   0x4 LB: > { %s541_s15 = sadd.s32 4294967295, %s722_s14   ;;  %s542_s16 = sadd.s32 4294967294, %s722_s14   ;;  %s722_s14 = sphi %s751_s14, %s15_s14   ;;  %s718_s13 = sphi %s749_s13, %s1023_s13   ;;  %s714_s12 = sphi %s747_s12, %s1022_s12   ;;  %s710_s11 = sphi %s745_s11, %s1021_s11   ;;  %s706_s10 = sphi %s743_s10, %s1020_s10   ;;  %s702_s9 = sphi %s741_s9, %s1019_s9  }
   0x5   : > { %s27_s17 = sadd.s32 1, %s718_s13  ;;  %s90_s18 = sadd.s32 1, %s710_s11 }
   0x6   : > { %p29_p0 = scmp.ge.s32.totalorder %s27_s17, 2  ;;  %p100_p1 = scmp.ne.s32.totalorder %s710_s11, %s706_s10 }
   0x7   : > { %p101_p2 = scmp.eq.s32.totalorder %s541_s15, 1  ;;  %p106_p3 = scmp.ne.s32.totalorder %s706_s10, %s702_s9 }
   0x8   : > { %s1025_s17 = smov (%p29_p0, %s27_s17), 0  ;;  %p107_p5 = scmp.eq.s32.totalorder %s542_s16, 1 }
   0x9   : > { %p781_p4 = por %p101_p2, %p100_p1  ;;  %s85_s20 = ssub.s32 %s718_s13, %s1025_s17 }
   0xa   : > { %p545_p6 = scmp.ge.s32.totalorder %s722_s14, 1  ;;  %p88_p7 = scmp.eq.s32.totalorder %s85_s20, 0 }
   0xb   : > { %p788_p8 = por %p107_p5, %p106_p3  ;;  %p146_p9 = scmp.lt.s32.totalorder %s722_s14, 3 }
   0xc   : > { %s794_s22 = scalar_select %p88_p7, %s710_s11, %s90_s18  }
   0xd   : > { %p147_p10 = pnand %p545_p6, %p146_p9 }
   0xe   : > { %p178_p11 = scmp.lt.s32.totalorder (!%p147_p10), %s714_s12, 1  ;;  %s174_s4 = sand.u32 (!%p147_p10), 1, %s706_s10  }
   0xf   : > { %150 = sbr.rel (%p147_p10) target bundleno = 325 (0x145), region = 28  ;;  %s546_s5 = sshll.u32 (!%p147_p10), %s174_s4, 5 }
  0x10   : > { %s176_s6 = scalar_lea.vmem (!%p147_p10), [#allocation2], %s546_s5  ;;  %s562_s7 = sshll.u32 (!%p147_p10), %s714_s12, 5 }
  0x11   : > { %s446_s16 = scalar_lea.hbm (!%p147_p10), %s1008_s2, %s562_s7  ;;  %s447_s18 = sshll.u32 (!%p147_p10), %s176_s6, 4  ;;  %s448_s18 = int_to_ptr.vmem [resolvable:$true] %s447_s18 }
  0x12   : > { %s433_s20 = scalar_lea.sflag (!%p147_p10), [#allocation3], %s174_s4 }
  0x14   : > { %s798_s23 = scalar_select %p178_p11, %s714_s12, 1  ;;  %vm214_vm0 = vcmask 261120   ;;  %vm339_vm1 = vcmask 523264  }
  0x15   : > { %s449_s12 = sshll.u32 %s446_s16, 4  ;;  %s450_s12 = int_to_ptr.hbm [resolvable:$true] %s449_s12 }
  0x16   : > { %s560_s24 = sshll.u32 %s798_s23, 6  ;;  %s561_s28 = sshll.u32 %s798_s23, 5 }
  0x17   : > { %s185_s27 = scalar_lea.vmem %s1006_s0, %s560_s24  ;;  %s191_s3 = scalar_lea.vmem %s1007_s1, %s561_s28 }
  0x18   : > { %v804_v0 = vld [vmem:[%s185_s27 + $0x30] sm:$0xff]  ;;  %v806_v1 = vld [vmem:[%s185_s27 + $0x20] sm:$0xff]  ;;  %v816_v6 = vld [vmem:[%s185_s27 + $0x38] sm:$0xff]  ;;  %s658_s23 = sshra.s32 %s450_s12, 4  ;;  %s659_s23 = int_to_ptr.hbm [resolvable:$true] %s658_s23 }
  0x19   : > { %v808_v2 = vld [vmem:[%s185_s27] sm:$0xff]  ;;  %v212_v3 = vmul.f32 %v804_v0, %v804_v0  ;;  %v210_v4 = vmul.f32 %v806_v1, %v806_v1  ;;  %v818_v7 = vld [vmem:[%s185_s27 + $0x28] sm:$0xff]  ;;  %v213_v12 = vmul.f32 %v816_v6, %v816_v6  ;;  %v834_v18 = vld [vmem:[%s185_s27 + $0x18] sm:$0xff]  ;;  %s660_s24 = scalar_lea.hbm %s659_s23, 32  ;;  %p665_p1 = scmp.lt.s32.totalorder %s659_s23, %s1008_s2 }
  0x1a   : > { %v206_v5 = vmul.f32 %v808_v2, %v808_v2  ;;  %v823_v11 = vld [vmem:[%s185_s27 + $0x8] sm:$0xff]  ;;  %v211_v13 = vmul.f32 %v818_v7, %v818_v7  ;;  %v836_v19 = vld [vmem:[%s185_s27 + $0x10] sm:$0xff]  ;;  %v209_v20 = vmul.f32 %v834_v18, %v834_v18  ;;  %v202_v24 = vld [vmem:[%s191_s3] sm:$0xff]  ;;  %p661_p12 = scmp.ne.s32.totalorder %s659_s23, %s660_s24  ;;  %s664_s27 = scalar_lea.hbm %s1008_s2, 64 }
  0x1b   : > { %v233_v8 = vsel %vm214_vm0, %v212_v3, 0.0  ;;  %v227_v9 = vsel %vm214_vm0, %v210_v4, 0.0  ;;  %v207_v14 = vmul.f32 %v823_v11, %v823_v11  ;;  %v236_v15 = vsel %vm214_vm0, %v213_v12, 0.0  ;;  %v203_v25 = vld [vmem:[%s191_s3 + $0x8] sm:$0xff]  ;;  %v204_v28 = vld [vmem:[%s191_s3 + $0x10] sm:$0xff]  ;;  %v205_v32 = vld [vmem:[%s191_s3 + $0x18] sm:$0xff]  ;;  %p666_p2 = scmp.lt.s32.totalorder %s664_s27, %s660_s24 }
  0x1c   : > { %v215_v10 = vsel %vm214_vm0, %v206_v5, 0.0  ;;  %234 = vadd.xlane.f32.xlu1 %v233_v8  ;;  %228 = vadd.xlane.f32.xlu0 %v227_v9  ;;  %v230_v16 = vsel %vm214_vm0, %v211_v13, 0.0  ;;  %v208_v21 = vmul.f32 %v836_v19, %v836_v19  ;;  %v224_v22 = vsel %vm214_vm0, %v209_v20, 0.0  ;;  %p662_p13 = pnand %p661_p12, %p781_p4 }
  0x1d   : > { %216 = vadd.xlane.f32.xlu2 %v215_v10  ;;  %v218_v17 = vsel %vm214_vm0, %v207_v14, 0.0  ;;  %v335_v26 = vmul.f32 %v202_v24, %v202_v24  ;;  %v336_v27 = vmul.f32 %v203_v25, %v203_v25  ;;  %v337_v29 = vmul.f32 %v204_v28, %v204_v28  ;;  %p667_p3 = por %p666_p2, %p665_p1 }
  0x1e   : > { %v221_v23 = vsel %vm214_vm0, %v208_v21, 0.0  ;;  %v338_v34 = vmul.f32 %v205_v32, %v205_v32  ;;  %p663_p0 = pneg %p662_p13 }
  0x1f   : > { %v340_v30 = vsel %vm339_vm1, %v335_v26, 0.0  ;;  %v341_v31 = vsel %vm339_vm1, %v336_v27, 0.0  ;;  %v343_v35 = vsel %vm339_vm1, %v337_v29, 0.0 }
  0x20   : > { %v342_v33 = vadd.f32 %v341_v31, %v340_v30  ;;  %v345_v37 = vsel %vm339_vm1, %v338_v34, 0.0  ;;  %p668_p5 = pnand %p667_p3, %p663_p0 }
  0x22   : > { %v344_v36 = vadd.f32 %v343_v35, %v342_v33 }
  0x24   : > { %237 = vadd.xlane.f32.xlu1 %v236_v15  ;;  %231 = vadd.xlane.f32.xlu0 %v230_v16  ;;  %v346_v38 = vadd.f32 %v345_v37, %v344_v36 }
  0x25   : > { %219 = vadd.xlane.f32.xlu2 %v218_v17 }
  0x26   : > { %v347_v39 = vrot.slane %v346_v38, 4 }
  0x28   : > { %v348_v40 = vadd.f32 %v347_v39, %v346_v38 }
  0x2a   : > { %v349_v41 = vrot.slane %v348_v40, 2 }
  0x2c   : > { %225 = vadd.xlane.f32.xlu1 %v224_v22  ;;  %222 = vadd.xlane.f32.xlu0 %v221_v23  ;;  %v350_v42 = vadd.f32 %v349_v41, %v348_v40 }
  0x2e   : > { %v351_v43 = vrot.slane %v350_v42, 1 }
  0x30   : > { %v352_v44 = vadd.f32 %v351_v43, %v350_v42 }
  0x32   : > { %v353_v45 = vadd.f32 1e-06, %v352_v44 }
  0x34   : > { %626 = vrsqrt.f32 %v353_v45  ;;  %vm360_vm2 = vweird.f32 %v353_v45 }
  0x3a   : > { %v627_v46 = vpop.eup %626 }
  0x3b   : > { %v355_v47 = vmul.f32 %v627_v46, %v353_v45  ;;  %vm361_vm3 = vweird.f32 %v627_v46 }
  0x3c   : > { %vm362_vm4 = vmor %vm360_vm2, %vm361_vm3 }
  0x3d   : > { %v356_v48 = vmul.f32 %v627_v46, %v355_v47 }
  0x3f   : > { %v357_v49 = vmul.f32 0.5, %v356_v48 }
  0x41   : > { %v358_v50 = vsub.f32 1.5, %v357_v49 }
  0x43   : > { %v359_v51 = vmul.f32 %v627_v46, %v358_v50 }
  0x45   : > { %v363_v52 = vsel %vm362_vm4, %v627_v46, %v359_v51 }
  0x46   : > { %v366_v53 = vmul.f32 %v363_v52, %v204_v28  ;;  %v367_v54 = vmul.f32 %v363_v52, %v205_v32  ;;  %v364_v56 = vmul.f32 %v363_v52, %v202_v24  ;;  %v365_v57 = vmul.f32 %v363_v52, %v203_v25 }
  0x48   : > { %v373_v55 = vpack.c.bf16 %v367_v54, %v366_v53  ;;  %v372_v58 = vpack.c.bf16 %v365_v57, %v364_v56 }
  0x4a   : > { %392 = vmatpush.bf16.msra.mxu0 %v373_v55  ;;  %564 = vmatpush.bf16.msra.mxu2 %v373_v55 }
  0x4b   : > { %565 = vmatpush.bf16.msra.mxu3 %v373_v55  ;;  %563 = vmatpush.bf16.msra.mxu1 %v373_v55 }
  0x4e   : > { %393 = vmatpush.bf16.msra.mxu0 %v372_v58  ;;  %567 = vmatpush.bf16.msra.mxu2 %v372_v58 }
  0x4f   : > { %568 = vmatpush.bf16.msra.mxu3 %v372_v58  ;;  %566 = vmatpush.bf16.msra.mxu1 %v372_v58 }
  0x8f   : > { %v235_v59 = vpop.xlane.xlu1 %234  ;;  %v229_v60 = vpop.xlane.xlu0 %228 }
  0x90   : > { %v245_v61 = vadd.f32 1e-06, %v235_v59  ;;  %v848_v62 = vadd.f32 1e-06, %v229_v60  ;;  %v217_v63 = vpop.xlane.xlu2 %216 }
  0x91   : > { %v850_v3 = vadd.f32 1e-06, %v217_v63 }
  0x92   : > { %628 = vrsqrt.f32 %v245_v61  ;;  %vm313_vm5 = vweird.f32 %v245_v61  ;;  %vm293_vm6 = vweird.f32 %v848_v62 }
  0x93   : > { %630 = vrsqrt.f32 %v848_v62  ;;  %vm253_vm8 = vweird.f32 %v850_v3 }
  0x94   : > { %632 = vrsqrt.f32 %v850_v3 }
  0x97   : > { %v238_v4 = vpop.xlane.xlu1 %237  ;;  %v232_v5 = vpop.xlane.xlu0 %231 }
  0x98   : > { %v854_v8 = vpop.eup %628  ;;  %v856_v9 = vadd.f32 1e-06, %v238_v4  ;;  %v858_v10 = vadd.f32 1e-06, %v232_v5  ;;  %v220_v12 = vpop.xlane.xlu2 %219 }
  0x99   : > { %v860_v13 = vpop.eup %630  ;;  %v308_v14 = vmul.f32 %v854_v8, %v245_v61  ;;  %v863_v15 = vadd.f32 1e-06, %v220_v12  ;;  %vm314_vm7 = vweird.f32 %v854_v8 }
  0x9a   : > { %v865_v16 = vpop.eup %632  ;;  %v288_v17 = vmul.f32 %v860_v13, %v848_v62  ;;  %634 = vrsqrt.f32 %v856_v9  ;;  %vm294_vm9 = vweird.f32 %v860_v13  ;;  %vm323_vm11 = vweird.f32 %v856_v9  ;;  %vm900_vm12 = vmor %vm313_vm5, %vm314_vm7 }
  0x9b   : > { %v309_v20 = vmul.f32 %v854_v8, %v308_v14  ;;  %v248_v21 = vmul.f32 %v865_v16, %v850_v3  ;;  %636 = vrsqrt.f32 %v858_v10  ;;  %vm254_vm10 = vweird.f32 %v865_v16  ;;  %vm907_vm14 = vmor %vm293_vm6, %vm294_vm9 }
  0x9c   : > { %v289_v22 = vmul.f32 %v860_v13, %v288_v17  ;;  %638 = vrsqrt.f32 %v863_v15  ;;  %vm263_vm1 = vweird.f32 %v863_v15  ;;  %vm914_vm3 = vmor %vm253_vm8, %vm254_vm10  ;;  %vm303_vm5 = vweird.f32 %v858_v10 }
  0x9d   : > { %v249_v23 = vmul.f32 %v865_v16, %v248_v21  ;;  %v310_v25 = vmul.f32 0.5, %v309_v20 }
  0x9e   : > { %v290_v24 = vmul.f32 0.5, %v289_v22 }
  0x9f   : > { %v250_v26 = vmul.f32 0.5, %v249_v23  ;;  %v226_v27 = vpop.xlane.xlu1 %225  ;;  %v223_v28 = vpop.xlane.xlu0 %222  ;;  %v311_v38 = vsub.f32 1.5, %v310_v25 }
  0xa0   : > { %v877_v29 = vpop.eup %634  ;;  %v879_v30 = vadd.f32 1e-06, %v226_v27  ;;  %v881_v31 = vadd.f32 1e-06, %v223_v28  ;;  %v291_v33 = vsub.f32 1.5, %v290_v24 }
  0xa1   : > { %v637_v32 = vpop.eup %636  ;;  %v318_v34 = vmul.f32 %v877_v29, %v856_v9  ;;  %v251_v36 = vsub.f32 1.5, %v250_v26  ;;  %v312_v47 = vmul.f32 %v854_v8, %v311_v38  ;;  %vm324_vm13 = vweird.f32 %v877_v29 }
  0xa2   : > { %v639_v35 = vpop.eup %638  ;;  %v298_v37 = vmul.f32 %v637_v32, %v858_v10  ;;  %640 = vrsqrt.f32 %v879_v30  ;;  %v292_v42 = vmul.f32 %v860_v13, %v291_v33  ;;  %vm304_vm15 = vweird.f32 %v637_v32  ;;  %vm925_vm4 = vmor %vm323_vm11, %vm324_vm13 }
  0xa3   : > { %v319_v39 = vmul.f32 %v877_v29, %v318_v34  ;;  %v258_v40 = vmul.f32 %v639_v35, %v863_v15  ;;  %642 = vrsqrt.f32 %v881_v31  ;;  %v252_v45 = vmul.f32 %v865_v16, %v251_v36  ;;  %vm305_vm6 = vmor %vm303_vm5, %vm304_vm15 }
  0xa4   : > { %v299_v41 = vmul.f32 %v637_v32, %v298_v37  ;;  %vm264_vm2 = vweird.f32 %v639_v35  ;;  %v296_v58 = vsel %vm907_vm14, %v860_v13, %v292_v42  ;;  %v316_v5 = vsel %vm900_vm12, %v854_v8, %v312_v47 }
  0xa5   : > { %v320_v43 = vmul.f32 0.5, %v319_v39  ;;  %v259_v44 = vmul.f32 %v639_v35, %v258_v40  ;;  %v256_v62 = vsel %vm914_vm3, %v865_v16, %v252_v45  ;;  %vm265_vm7 = vmor %vm263_vm1, %vm264_vm2  ;;  %v331_v10 = vmul.f32 %v296_v58, %v806_v1 }
  0xa6   : > { %v300_v46 = vmul.f32 0.5, %v299_v41  ;;  %v327_v20 = vmul.f32 %v256_v62, %v808_v2  ;;  %v333_v21 = vmul.f32 %v316_v5, %v804_v0  ;;  %vm283_vm9 = vweird.f32 %v879_v30 }
  0xa7   : > { %v321_v49 = vsub.f32 1.5, %v320_v43  ;;  %v260_v50 = vmul.f32 0.5, %v259_v44  ;;  %vm273_vm12 = vweird.f32 %v881_v31  ;;  %vm423_vm14 = vcmask 519168  }
  0xa8   : > { %v641_v51 = vpop.eup %640  ;;  %v301_v53 = vsub.f32 1.5, %v300_v46 }
  0xa9   : > { %v322_v55 = vmul.f32 %v877_v29, %v321_v49  ;;  %v261_v56 = vsub.f32 1.5, %v260_v50  ;;  %v278_v57 = vmul.f32 %v641_v51, %v879_v30  ;;  %v643_v59 = vpop.eup %642  ;;  %vm284_vm8 = vweird.f32 %v641_v51 }
  0xaa   : > { %v302_v61 = vmul.f32 %v637_v32, %v301_v53  ;;  %v268_v4 = vmul.f32 %v643_v59, %v881_v31  ;;  %vm274_vm10 = vweird.f32 %v643_v59  ;;  %vm285_vm11 = vmor %vm283_vm9, %vm284_vm8 }
  0xab   : > { %v262_v63 = vmul.f32 %v639_v35, %v261_v56  ;;  %v279_v3 = vmul.f32 %v641_v51, %v278_v57  ;;  %v326_v12 = vsel %vm925_vm4, %v877_v29, %v322_v55  ;;  %vm275_vm13 = vmor %vm273_vm12, %vm274_vm10 }
  0xac   : > { %v306_v9 = vsel %vm305_vm6, %v637_v32, %v302_v61  ;;  %v269_v14 = vmul.f32 %v643_v59, %v268_v4  ;;  %v334_v15 = vmul.f32 %v326_v12, %v816_v6 }
  0xad   : > { %v280_v13 = vmul.f32 0.5, %v279_v3  ;;  %v266_v16 = vsel %vm265_vm7, %v639_v35, %v262_v63  ;;  %v332_v17 = vmul.f32 %v306_v9, %v818_v7 }
  0xae   : > { %v328_v8 = vmul.f32 %v266_v16, %v823_v11  ;;  %v270_v1 = vmul.f32 0.5, %v269_v14  ;;  %v371_v25 = vpack.c.bf16 %v334_v15, %v333_v21 }
  0xaf   : > { %v281_v22 = vsub.f32 1.5, %v280_v13  ;;  %v370_v23 = vpack.c.bf16 %v332_v17, %v331_v10 }
  0xb0   : > { %v368_v24 = vpack.c.bf16 %v328_v8, %v327_v20  ;;  %v271_v27 = vsub.f32 1.5, %v270_v1  ;;  %554 = vmatmul.msk.bf16.vlgmr.msra.gmra.mxu3 %vm214_vm0, %v371_v25 }
  0xb1   : > { %v282_v26 = vmul.f32 %v641_v51, %v281_v22  ;;  %553 = vmatmul.msk.bf16.vlgmr.msra.gmra.mxu2 %vm214_vm0, %v370_v23 }
  0xb2   : > { %551 = vmatmul.msk.bf16.vlgmr.msra.gmra.mxu0 %vm214_vm0, %v368_v24  ;;  %v272_v0 = vmul.f32 %v643_v59, %v271_v27 }
  0xb3   : > { %v286_v2 = vsel %vm285_vm11, %v641_v51, %v282_v26 }
  0xb4   : > { %v330_v6 = vmul.f32 %v286_v2, %v834_v18  ;;  %v276_v7 = vsel %vm275_vm13, %v643_v59, %v272_v0 }
  0xb5   : > { %v329_v11 = vmul.f32 %v276_v7, %v836_v19 }
  0xb7   : > { %v369_v28 = vpack.c.bf16 %v330_v6, %v329_v11 }
  0xb9   : > { %552 = vmatmul.msk.bf16.vlgmr.msra.gmra.mxu1 %vm214_vm0, %v369_v28 }
 0x12f   : > { %v395_v29 = vpop.f32.mrf.mxu0 }
 0x130   : > { %v415_v30 = vpack.c.bf16 %v395_v29, %v395_v29 }
 0x132   : > { %424 = vst.msk [vmem:[%s176_s6] sm:$0xf] %vm423_vm14, %v415_v30 }
 0x133   : > { %v410_v33 = vpop.f32.mrf.mxu3 }
 0x134   : > { %v405_v31 = vpop.f32.mrf.mxu2  ;;  %v421_v18 = vpack.c.bf16 %v410_v33, %v410_v33 }
 0x135   : > { %v419_v32 = vpack.c.bf16 %v405_v31, %v405_v31 }
 0x136   : > { %v400_v34 = vpop.f32.mrf.mxu1  ;;  %430 = vst.msk [vmem:[%s176_s6 + $0x18] sm:$0xf] %vm423_vm14, %v421_v18 }
 0x137   : > { %428 = vst.msk [vmem:[%s176_s6 + $0x10] sm:$0xf] %vm423_vm14, %v419_v32  ;;  %v397_v19 = vpop.f32.mrf.mxu0  ;;  %v417_v36 = vpack.c.bf16 %v400_v34, %v400_v34 }
 0x138   : > { %v416_v35 = vpack.c.bf16 %v397_v19, %v397_v19 }
 0x139   : > { %426 = vst.msk [vmem:[%s176_s6 + $0x8] sm:$0xf] %vm423_vm14, %v417_v36 }
 0x13a   : > { %425 = vst.msk [vmem:[%s176_s6 + $0x4] sm:$0xf] %vm423_vm14, %v416_v35 }
 0x13b   : > { %v412_v39 = vpop.f32.mrf.mxu3 }
 0x13c   : > { %v407_v37 = vpop.f32.mrf.mxu2  ;;  %v422_v40 = vpack.c.bf16 %v412_v39, %v412_v39 }
 0x13d   : > { %v420_v38 = vpack.c.bf16 %v407_v37, %v407_v37 }
 0x13e   : > { %v402_v41 = vpop.f32.mrf.mxu1  ;;  %431 = vst.msk [vmem:[%s176_s6 + $0x1c] sm:$0xf] %vm423_vm14, %v422_v40 }
 0x13f   : > { %429 = vst.msk [vmem:[%s176_s6 + $0x14] sm:$0xf] %vm423_vm14, %v420_v38  ;;  %v418_v42 = vpack.c.bf16 %v402_v41, %v402_v41 }
 0x141   : > { %427 = vst.msk [vmem:[%s176_s6 + $0xc] sm:$0xf] %vm423_vm14, %v418_v42 }
 0x142   : > { %671 = shalt.err (!%p668_p5)
}
 0x143   : > { %s724_s30 = smov 64   ;;  %s725_s3 = smov 4  }
 0x144   : > { %569 = dma.vmem_to_hbm [thread:$0]  (%p781_p4), %s448_s18, 512, %s450_s12, %s433_s20, %s724_s30, %s724_s30, %s725_s3  }
 0x145 PF: > { %p575_p6 = scmp.ge.s32.totalorder %s722_s14, 2  ;;  %s464_s4 = sand.u32 1, %s702_s9  }
 0x146   : > { %s465_s5 = scalar_lea.sflag [#allocation3], %s464_s4 }
 0x147   : > { %p572_p7 = pnand %p575_p6, %p788_p8 }
 0x149   : > { %p573_p9 = pneg %p572_p7 }
 0x14b   : > { %697 = dma.done.wait (%p573_p9), %s465_s5, 512  }
 0x14c   : > { %699 = vsyncadd (%p573_p9), %s465_s5, 4294966784  ;;  %s15_s14 = sadd.s32 1, %s722_s14   ;;  %s1019_s9 = smov %s706_s10 }
 0x14d   : > { %p12_p10 = scmp.ge.s32.totalorder %s15_s14, 4   ;;  %s1020_s10 = smov %s710_s11 }
 0x14e   : > { %s1021_s11 = smov %s794_s22  ;;  %s1022_s12 = smov %s718_s13 }
 0x14f   : > { %s1023_s13 = smov %s1025_s17  ;;  %14 = sbr.rel (!%p12_p10) target bundleno = 4 (0x4), region = 66 }
 0x154   :  { %471 = vsyncpa [#allocation3], 1 }
 0x155   :  { %473 = vsyncpa [#allocation3 + $0x1], 1 }

</bundles_post_ra>
